<compile_context>
chip_gen: v7x
topology: tpu7x:2x2x1
jax: 0.10.0
libtpu: 0.0.40
codegen_flags: <defaults>
</compile_context>

<pallas_src>
import math

import jax
import jax.numpy as jnp
from jax.experimental import pallas as pl
from jax.experimental.pallas import tpu as pltpu


def _round_up(v, m):
    return ((v + m - 1) // m) * m


def _time_agg_kernel(x_ref, w_ref, o_ref):
    """out[b, j] = sum_k x[b, k] * w[k, j]   (k = flattened (t, i))."""
    o_ref[...] = jnp.dot(
        x_ref[...], w_ref[...], preferred_element_type=jnp.float32
    ).astype(o_ref.dtype)


def _time_agg_kernel_ktiled(x_ref, w_ref, o_ref, acc_ref):
    """Same contraction, K streamed in (bk, C) slabs; f32 accumulator in VMEM."""
    k = pl.program_id(1)

    @pl.when(k == 0)
    def _():
        acc_ref[...] = jnp.zeros_like(acc_ref)

    acc_ref[...] += jnp.dot(
        x_ref[...], w_ref[...], preferred_element_type=jnp.float32
    )

    @pl.when(k == pl.num_programs(1) - 1)
    def _():
        o_ref[...] = acc_ref[...].astype(o_ref.dtype)


def _vmem_budget_bytes():
    """~3/4 of physical VMEM: ~96 MiB on v5e/v6e, ~48 MiB on v7x."""
    physical = 64 << 20  # conservative fallback (v7x per-core VMEM)
    try:
        info = pltpu.get_tpu_info()
        cap = getattr(info, "vmem_capacity_bytes", None)
        if cap:
            physical = int(cap)
    except Exception:
        pass
    return (physical * 3) // 4


def time_aggregator(x, w, gamma=None, agg_type="mlp", compute_dtype=None,
                    block_b=1024):
    """Pallas implementation of TimeAggregator.forward.

    x:     (..., T, C)
    w:     (T, C, C)
    gamma: (1, C)  (only used when agg_type == 'exp_mlp')
    returns (..., C) in x's original dtype.
    """
    *lead, T, C = x.shape
    B = math.prod(lead) if lead else 1
    out_dtype = x.dtype

    # Fold the (optional) time embedding into the weights once, in f32.
    if agg_type == "exp_mlp":
        t = jnp.linspace(0.0, 1.0, T, dtype=jnp.float32)[:, None]      # (T, 1)
        t_embed = jnp.cos(t @ gamma.astype(jnp.float32))               # (T, C)
        w_eff = (w.astype(jnp.float32) * t_embed[:, :, None]).astype(w.dtype)
    elif agg_type == "mlp":
        w_eff = w
    else:
        raise ValueError(f"unknown type {agg_type}")

    if compute_dtype is not None:
        x = x.astype(compute_dtype)
        w_eff = w_eff.astype(compute_dtype)

    K = T * C
    x_flat = x.reshape(B, K)
    w_flat = w_eff.reshape(K, C)

    # Lane-dense output: pad the output channel dim up to a multiple of 128 so
    # the out tile gets unmasked full-lane stores. Weight pad cost is tiny.
    C_pad = _round_up(C, 128)
    if C_pad != C:
        w_flat = jnp.pad(w_flat, ((0, 0), (0, C_pad - C)))

    x_it = x_flat.dtype.itemsize
    w_it = w_flat.dtype.itemsize
    o_it = jnp.dtype(out_dtype).itemsize

    budget = _vmem_budget_bytes()

    # VMEM cost of the simple (whole-K-resident) layout:
    #   x tile double-buffered + weight single-buffered + out double-buffered.
    w_bytes = K * C_pad * w_it
    per_row = 2 * K * x_it + 2 * C_pad * o_it
    simple_ok = w_bytes + 128 * per_row <= budget      # >=128-row x tiles fit
    use_ktiled = (not simple_ok) and (C % 128 == 0) and T > 1

    # Single-buffer the constant-index weight block when supported.
    w_const_kwargs = {}
    if hasattr(pl, "Buffered"):
        w_const_kwargs["pipeline_mode"] = pl.Buffered(1)

    def _params(sem):
        return pltpu.CompilerParams(dimension_semantics=sem,
                                    vmem_limit_bytes=budget)

    if not use_ktiled:
        # ---- simple path: one (bm, K) x (K, C_pad) matmul per grid step ----
        bm = min(block_b, B, max(8, (budget - w_bytes) // per_row))
        if B >= 4 * 128:
            # >= 4 grid blocks: >=2 per v7x TensorCore so x DMA pipelines.
            bm = min(bm, pl.cdiv(B, 4))
        bm = (bm // 128) * 128 if bm >= 128 else max(8, _round_up(bm, 8))
        # TODO(synk): if C % 128 != 0 AND the resident (K, C_pad) weight alone
        # exceeds the VMEM budget, this path can still overflow VMEM; such
        # configs need a K-tiled variant with a non-128-multiple K tile.

        out = pl.pallas_call(
            _time_agg_kernel,
            out_shape=jax.ShapeDtypeStruct((B, C_pad), out_dtype),
            grid_spec=pltpu.PrefetchScalarGridSpec(
                num_scalar_prefetch=0,
                grid=(pl.cdiv(B, bm),),
                in_specs=[
                    pl.BlockSpec((bm, K), lambda i: (i, 0)),
                    pl.BlockSpec((K, C_pad), lambda i: (0, 0),
                                 **w_const_kwargs),
                ],
                out_specs=pl.BlockSpec((bm, C_pad), lambda i: (i, 0)),
            ),
            compiler_params=_params(("parallel",)),
        )(x_flat, w_flat)
    else:
        # ---- K-tiled path (large T*C*C weights, v7x 64 MiB VMEM) ------------
        bm = 128

        def cost(bk_, bm_):
            return (2 * bm_ * bk_ * x_it            # x tile, double-buffered
                    + 2 * bk_ * C_pad * w_it        # weight slab, double-buffered
                    + 2 * bm_ * C_pad * o_it        # out tile
                    + bm_ * C_pad * 4)              # f32 accumulator scratch

        # bk = t_chunk * C with t_chunk | T, largest that fits the budget.
        t_chunk = 1
        for d in range(T, 0, -1):
            if T % d == 0 and cost(d * C, bm) <= budget:
                t_chunk = d
                break
        bk = t_chunk * C
        while (cost(bk, bm * 2) <= budget
               and bm * 2 <= min(block_b, _round_up(B, 128))):
            bm *= 2

        out = pl.pallas_call(
            _time_agg_kernel_ktiled,
            out_shape=jax.ShapeDtypeStruct((B, C_pad), out_dtype),
            grid_spec=pltpu.PrefetchScalarGridSpec(
                num_scalar_prefetch=0,
                grid=(pl.cdiv(B, bm), K // bk),
                in_specs=[
                    pl.BlockSpec((bm, bk), lambda i, k: (i, k)),
                    pl.BlockSpec((bk, C_pad), lambda i, k: (k, 0)),
                ],
                out_specs=pl.BlockSpec((bm, C_pad), lambda i, k: (i, 0)),
                scratch_shapes=[pltpu.VMEM((bm, C_pad), jnp.float32)],
            ),
            compiler_params=_params(("parallel", "arbitrary")),
        )(x_flat, w_flat)

    if C_pad != C:
        out = out[:, :C]
    return out.reshape(*lead, C)


def _reference(x, w, gamma, agg_type):
    if agg_type == "exp_mlp":
        T = x.shape[-2]
        t = jnp.linspace(0.0, 1.0, T, dtype=jnp.float32)[:, None]
        t_embed = jnp.cos(t @ gamma.astype(jnp.float32))
        x = x * t_embed
    return jnp.einsum("tij,...ti->...j", w, x,
                      precision=jax.lax.Precision.HIGHEST)


if __name__ == "__main__":
    # Small shapes consistent with the module: batch=2, spatial 8x8,
    # n_timesteps=8, out_channels=64 (x channels == out_channels per einsum).
    batch, H, W = 2, 8, 8
    T, C = 8, 64

    key = jax.random.PRNGKey(0)
    kx, kw, kx2 = jax.random.split(key, 3)

    # Deterministic parameter init mirroring the PyTorch __init__:
    # w ~ 1/(T * C**0.5) * N(0, 1), shape (T, C, C)
    w = (1.0 / (T * C ** 0.5)) * jax.random.normal(kw, (T, C, C), jnp.float32)
    # gamma = 2 ** linspace(-10, 10, C), shape (1, C)
    gamma = 2.0 ** jnp.linspace(-10.0, 10.0, C, dtype=jnp.float32)[None, :]

    x = jax.random.normal(kx, (batch, H, W, T, C), jnp.float32)

    ok = True
    for agg_type in ("mlp", "exp_mlp"):
        out = jax.block_until_ready(
            time_aggregator(x, w, gamma=gamma, agg_type=agg_type))
        ref = _reference(x, w, gamma, agg_type)
        ok &= out.shape == (batch, H, W, C)
        ok &= bool(jnp.allclose(out, ref, rtol=1e-3, atol=1e-3))

    # Non-divisible leading shape: exercises the ragged-last-block path
    # (no host-side padding of x anymore).
    x_odd = jax.random.normal(kx2, (3, 5, 7, T, C), jnp.float32)
    out_odd = jax.block_until_ready(
        time_aggregator(x_odd, w, gamma=gamma, agg_type="exp_mlp"))
    ref_odd = _reference(x_odd, w, gamma, "exp_mlp")
    ok &= out_odd.shape == (3, 5, 7, C)
    ok &= bool(jnp.allclose(out_odd, ref_odd, rtol=1e-3, atol=1e-3))

    # bf16 fast path (inputs cast in the wrapper; MXU accumulates in f32).
    out_bf16 = jax.block_until_ready(
        time_aggregator(x, w, gamma=gamma, agg_type="exp_mlp",
                        compute_dtype=jnp.bfloat16))
    ref = _reference(x, w, gamma, "exp_mlp")
    ok &= bool(jnp.allclose(out_bf16, ref, rtol=5e-2, atol=5e-2))

    if ok:
        print("KERNEL_OK")
</pallas_src>

<mosaic_0001>
module attributes {stable_mosaic.version = 11 : i64} {
  func.func @_time_agg_kernel(%arg0: i32, %arg1: memref<128x512xf32, #tpu.memory_space<vmem>>, %arg2: memref<512x128xf32, #tpu.memory_space<vmem>>, %arg3: memref<128x128xf32, #tpu.memory_space<vmem>>) attributes {dimension_semantics = [#tpu.dimension_semantics<parallel>], iteration_bounds = array<i64: 1>, scalar_prefetch = 0 : i64, scratch_operands = 0 : i64, tpu.core_type = #tpu.core_type<tc>, window_params = [{transform_indices = @transform_0, window_bounds = array<i64: 128, 512>}, {pipeline_mode = #tpu.pipeline_mode<synchronous>, transform_indices = @transform_1, window_bounds = array<i64: 512, 128>}, {transform_indices = @transform_2, window_bounds = array<i64: 128, 128>}]} {
    %c0 = arith.constant 0 : index
    %c0_0 = arith.constant 0 : index
    %0 = vector.load %arg1[%c0, %c0_0] : memref<128x512xf32, #tpu.memory_space<vmem>>, vector<128x512xf32>
    %c0_1 = arith.constant 0 : index
    %c0_2 = arith.constant 0 : index
    %1 = vector.load %arg2[%c0_1, %c0_2] : memref<512x128xf32, #tpu.memory_space<vmem>>, vector<512x128xf32>
    %cst = arith.constant dense<0.000000e+00> : vector<128x128xf32>
    %2 = tpu.matmul %0, %1, %cst {dimension_numbers = #tpu.dot_dimension_numbers<[1], [0], [0], [1], [0, 0, 1, 1], [], []>} : vector<128x512xf32>, vector<512x128xf32>, vector<128x128xf32> -> vector<128x128xf32>
    %c0_3 = arith.constant 0 : index
    %c0_4 = arith.constant 0 : index
    %3 = vector.load %arg3[%c0_3, %c0_4] : memref<128x128xf32, #tpu.memory_space<vmem>>, vector<128x128xf32>
    tpu.vector_store %arg3[%c0_3, %c0_4], %2 {strides = array<i32>} : memref<128x128xf32, #tpu.memory_space<vmem>>, vector<128x128xf32>,
    return
  }
  func.func @transform_0(%arg0: i32) -> (i32, i32) {
    %c0_i32 = arith.constant 0 : i32
    %c0_i32_0 = arith.constant 0 : i32
    return %arg0, %c0_i32 : i32, i32
  }
  func.func @transform_1(%arg0: i32) -> (i32, i32) {
    %c0_i32 = arith.constant 0 : i32
    %c0_i32_0 = arith.constant 0 : i32
    %c0_i32_1 = arith.constant 0 : i32
    return %c0_i32, %c0_i32_0 : i32, i32
  }
  func.func @transform_2(%arg0: i32) -> (i32, i32) {
    %c0_i32 = arith.constant 0 : i32
    %c0_i32_0 = arith.constant 0 : i32
    return %arg0, %c0_i32 : i32, i32
  }
}

</mosaic_0001>

<bundles_post_ra>
// kernel: tpu_custom_call.1
= control target key start
LH: loop header
LB: loop body
LE: loop exit
PB: predicated region body
PF: predicated region fallthrough
CT: control target
= control target key end

     0   :  { %7 = vsyncpa [#allocation3], 0  ;;  %s859_s0 = inlined_call_operand.hbm [shape: f32[128,512], index: 0, kind: input, shape index: {}]   ;;  %s860_s1 = inlined_call_operand.hbm [shape: f32[512,128], index: 1, kind: input, shape index: {}]   ;;  %s861_s2 = inlined_call_operand.hbm [shape: f32[128,128], index: 2, kind: output, shape index: {}]  }
   0x1   :  { %8 = vsyncpa [#allocation6], 0 }
   0x2   :  { %9 = vsyncpa [#allocation4], 0  ;;  %s795_s9 = smov [#allocation2]   ;;  %s723_s13 = scalar_lea.hbm %s859_s0, 8192 }
   0x3   :  { %s15_s10 = sshll.u32 %s795_s9, 4  ;;  %p724_p0 = scmp.ne.s32.totalorder %s859_s0, %s723_s13  ;;  %s16_s10 = int_to_ptr.vmem [resolvable:$true] %s15_s10 }
   0x4   :  { %p727_p1 = scmp.lt.u32.totalorder %s723_s13, %s859_s0 }
   0x6   :  { %p729_p2 = pnand %p727_p1, %p724_p0 }
   0x8   :  { %732 = shalt.err (!%p729_p2)
}
   0x9   :  { %s733_s18 = scalar_lea.vmem %s16_s10, 8192  ;;  %p738_p4 = scmp.lt.s32.totalorder %s16_s10, %s16_s10 }
   0xa   :  { %p734_p3 = scmp.ne.s32.totalorder %s16_s10, %s733_s18  ;;  %p739_p5 = scmp.lt.s32.totalorder %s733_s18, %s733_s18 }
   0xc   :  { %p740_p6 = por %p739_p5, %p738_p4 }
   0xe   :  { %p741_p7 = pnand %p740_p6, %p734_p3 }
  0x10   :  { %744 = shalt.err (!%p741_p7)
}
  0x11   :  { %s796_s19 = smov 512   ;;  %s797_s20 = smov 32  }
  0x12   :  { %21 = dma.hbm_to_vmem [thread:$0]  %s859_s0, 8192, %s16_s10, [#allocation3], %s796_s19, %s796_s19, %s797_s20  }
  0x13   :  { %s798_s23 = smov [#allocation5]   ;;  %s745_s27 = scalar_lea.hbm %s860_s1, 8192 }
  0x14   :  { %s27_s24 = sshll.u32 %s798_s23, 4  ;;  %p746_p8 = scmp.ne.s32.totalorder %s860_s1, %s745_s27  ;;  %s28_s24 = int_to_ptr.vmem [resolvable:$true] %s27_s24 }
  0x15   :  { %p749_p9 = scmp.lt.u32.totalorder %s745_s27, %s860_s1 }
  0x17   :  { %p751_p10 = pnand %p749_p9, %p746_p8 }
  0x19   :  { %754 = shalt.err (!%p751_p10)
}
  0x1a   :  { %s755_s4 = scalar_lea.vmem %s28_s24, 8192  ;;  %p760_p12 = scmp.lt.s32.totalorder %s28_s24, %s28_s24 }
  0x1b   :  { %p756_p11 = scmp.ne.s32.totalorder %s28_s24, %s755_s4  ;;  %p761_p13 = scmp.lt.s32.totalorder %s755_s4, %s755_s4 }
  0x1d   :  { %p762_p0 = por %p761_p13, %p760_p12 }
  0x1f   :  { %p763_p1 = pnand %p762_p0, %p756_p11 }
  0x21   :  { %766 = shalt.err (!%p763_p1)
}
  0x22   :  { %s799_s0 = smov 128   ;;  %s800_s5 = smov 8  }
  0x23   :  { %33 = dma.hbm_to_vmem [thread:$0]  %s860_s1, 8192, %s28_s24, [#allocation6], %s799_s0, %s799_s0, %s800_s5  }
  0x24   :  { %789 = dma.done.wait [#allocation3], 8192  }
  0x25   :  { %790 = vsyncadd [#allocation3], 4294959104 }
  0x26   :  { %791 = dma.done.wait [#allocation6], 8192  }
  0x27   :  { %792 = vsyncadd [#allocation6], 4294959104  ;;  %v120_v0 = vld [vmem:[#allocation5 + $0x80] sm:$0xff]  ;;  %v121_v1 = vld [vmem:[#allocation5 + $0x88] sm:$0xff]  ;;  %s801_s1 = smov [#allocation7]  }
  0x28   :  { %v152_v2 = vld [vmem:[#allocation5 + $0x180] sm:$0xff]  ;;  %v652_v3 = vpack.c.bf16 %v121_v1, %v120_v0  ;;  %v153_v4 = vld [vmem:[#allocation5 + $0x188] sm:$0xff]  ;;  %v122_v11 = vld [vmem:[#allocation5 + $0x90] sm:$0xff]  ;;  %s479_s8 = sshll.u32 %s801_s1, 4  ;;  %s480_s8 = int_to_ptr.vmem [resolvable:$true] %s479_s8 }
  0x29   :  { %v104_v5 = vld [vmem:[#allocation5] sm:$0xff]  ;;  %v105_v6 = vld [vmem:[#allocation5 + $0x8] sm:$0xff]  ;;  %v684_v7 = vpack.c.bf16 %v153_v4, %v152_v2  ;;  %v123_v13 = vld [vmem:[#allocation5 + $0x98] sm:$0xff]  ;;  %s767_s9 = scalar_lea.vmem %s480_s8, 2048  ;;  %p772_p3 = scmp.lt.s32.totalorder %s480_s8, %s480_s8 }
  0x2a   :  { %v654_v8 = vpack.c.bf16 %v105_v6, %v104_v5  ;;  %v136_v9 = vld [vmem:[#allocation5 + $0x100] sm:$0xff]  ;;  %v137_v10 = vld [vmem:[#allocation5 + $0x108] sm:$0xff]  ;;  %653 = vmatprep.subr.bf16.mxu0 %v652_v3  ;;  %v154_v14 = vld [vmem:[#allocation5 + $0x190] sm:$0xff]  ;;  %v656_v16 = vpack.c.bf16 %v123_v13, %v122_v11  ;;  %p768_p2 = scmp.ne.s32.totalorder %s480_s8, %s767_s9  ;;  %p773_p4 = scmp.lt.s32.totalorder %s767_s9, %s767_s9 }
  0x2b   :  { %v686_v12 = vpack.c.bf16 %v137_v10, %v136_v9  ;;  %v155_v15 = vld [vmem:[#allocation5 + $0x198] sm:$0xff]  ;;  %685 = vmatprep.subr.bf16.mxu1 %v684_v7  ;;  %v106_v18 = vld [vmem:[#allocation5 + $0x10] sm:$0xff]  ;;  %v124_v23 = vld [vmem:[#allocation5 + $0xa0] sm:$0xff] }
  0x2c   :  { %655 = vmatpush3.bf16.msra.mxu0 %v654_v8  ;;  %v688_v17 = vpack.c.bf16 %v155_v15, %v154_v14  ;;  %v107_v19 = vld [vmem:[#allocation5 + $0x18] sm:$0xff]  ;;  %v138_v20 = vld [vmem:[#allocation5 + $0x110] sm:$0xff]  ;;  %v125_v24 = vld [vmem:[#allocation5 + $0xa8] sm:$0xff]  ;;  %p774_p5 = por %p773_p4, %p772_p3 }
  0x2d   :  { %687 = vmatpush3.bf16.msra.mxu1 %v686_v12  ;;  %v658_v21 = vpack.c.bf16 %v107_v19, %v106_v18  ;;  %v139_v22 = vld [vmem:[#allocation5 + $0x118] sm:$0xff]  ;;  %657 = vmatprep.subr.bf16.mxu0 %v656_v16  ;;  %v660_v26 = vpack.c.bf16 %v125_v24, %v124_v23  ;;  %v156_v27 = vld [vmem:[#allocation5 + $0x1a0] sm:$0xff]  ;;  %v157_v28 = vld [vmem:[#allocation5 + $0x1a8] sm:$0xff] }
  0x2e   :  { %689 = vmatprep.subr.bf16.mxu1 %v688_v17  ;;  %v690_v25 = vpack.c.bf16 %v139_v22, %v138_v20  ;;  %v108_v29 = vld [vmem:[#allocation5 + $0x20] sm:$0xff]  ;;  %v692_v30 = vpack.c.bf16 %v157_v28, %v156_v27  ;;  %v109_v31 = vld [vmem:[#allocation5 + $0x28] sm:$0xff]  ;;  %v126_v35 = vld [vmem:[#allocation5 + $0xb0] sm:$0xff]  ;;  %p775_p6 = pnand %p774_p5, %p768_p2 }
  0x2f   :  { %v140_v32 = vld [vmem:[#allocation5 + $0x120] sm:$0xff]  ;;  %v141_v33 = vld [vmem:[#allocation5 + $0x128] sm:$0xff]  ;;  %v662_v34 = vpack.c.bf16 %v109_v31, %v108_v29  ;;  %v127_v36 = vld [vmem:[#allocation5 + $0xb8] sm:$0xff] }
  0x30   :  { %659 = vmatpush3.bf16.msra.mxu0 %v658_v21  ;;  %v158_v37 = vld [vmem:[#allocation5 + $0x1b0] sm:$0xff]  ;;  %v694_v38 = vpack.c.bf16 %v141_v33, %v140_v32  ;;  %v664_v39 = vpack.c.bf16 %v127_v36, %v126_v35  ;;  %v159_v40 = vld [vmem:[#allocation5 + $0x1b8] sm:$0xff]  ;;  %v128_v46 = vld [vmem:[#allocation5 + $0xc0] sm:$0xff] }
  0x31   :  { %691 = vmatpush3.bf16.msra.mxu1 %v690_v25  ;;  %661 = vmatprep.subr.bf16.mxu0 %v660_v26  ;;  %v110_v41 = vld [vmem:[#allocation5 + $0x30] sm:$0xff]  ;;  %v111_v42 = vld [vmem:[#allocation5 + $0x38] sm:$0xff]  ;;  %v696_v43 = vpack.c.bf16 %v159_v40, %v158_v37  ;;  %v129_v47 = vld [vmem:[#allocation5 + $0xc8] sm:$0xff] }
  0x32   :  { %693 = vmatprep.subr.bf16.mxu1 %v692_v30  ;;  %v142_v44 = vld [vmem:[#allocation5 + $0x130] sm:$0xff]  ;;  %v143_v45 = vld [vmem:[#allocation5 + $0x138] sm:$0xff]  ;;  %v160_v48 = vld [vmem:[#allocation5 + $0x1c0] sm:$0xff]  ;;  %v666_v50 = vpack.c.bf16 %v111_v42, %v110_v41  ;;  %v668_v52 = vpack.c.bf16 %v129_v47, %v128_v46 }
  0x33   :  { %v161_v49 = vld [vmem:[#allocation5 + $0x1c8] sm:$0xff]  ;;  %v698_v51 = vpack.c.bf16 %v143_v45, %v142_v44  ;;  %v112_v53 = vld [vmem:[#allocation5 + $0x40] sm:$0xff]  ;;  %v130_v58 = vld [vmem:[#allocation5 + $0xd0] sm:$0xff] }
  0x34   :  { %663 = vmatpush3.bf16.msra.mxu0 %v662_v34  ;;  %v113_v54 = vld [vmem:[#allocation5 + $0x48] sm:$0xff]  ;;  %v144_v55 = vld [vmem:[#allocation5 + $0x140] sm:$0xff]  ;;  %v700_v56 = vpack.c.bf16 %v161_v49, %v160_v48  ;;  %v131_v59 = vld [vmem:[#allocation5 + $0xd8] sm:$0xff] }
  0x35   :  { %695 = vmatpush3.bf16.msra.mxu1 %v694_v38  ;;  %665 = vmatprep.subr.bf16.mxu0 %v664_v39  ;;  %v145_v57 = vld [vmem:[#allocation5 + $0x148] sm:$0xff]  ;;  %v162_v60 = vld [vmem:[#allocation5 + $0x1d0] sm:$0xff]  ;;  %v163_v61 = vld [vmem:[#allocation5 + $0x1d8] sm:$0xff]  ;;  %v670_v62 = vpack.c.bf16 %v113_v54, %v112_v53  ;;  %v672_v0 = vpack.c.bf16 %v131_v59, %v130_v58 }
  0x36   :  { %697 = vmatprep.subr.bf16.mxu1 %v696_v43  ;;  %v702_v63 = vpack.c.bf16 %v145_v57, %v144_v55  ;;  %v114_v1 = vld [vmem:[#allocation5 + $0x50] sm:$0xff]  ;;  %v115_v2 = vld [vmem:[#allocation5 + $0x58] sm:$0xff]  ;;  %v704_v4 = vpack.c.bf16 %v163_v61, %v162_v60  ;;  %v132_v6 = vld [vmem:[#allocation5 + $0xe0] sm:$0xff] }
  0x37   :  { %v146_v3 = vld [vmem:[#allocation5 + $0x150] sm:$0xff]  ;;  %v147_v5 = vld [vmem:[#allocation5 + $0x158] sm:$0xff]  ;;  %v133_v7 = vld [vmem:[#allocation5 + $0xe8] sm:$0xff]  ;;  %v674_v10 = vpack.c.bf16 %v115_v2, %v114_v1 }
  0x38   :  { %667 = vmatpush3.bf16.msra.mxu0 %v666_v50  ;;  %v164_v8 = vld [vmem:[#allocation5 + $0x1e0] sm:$0xff]  ;;  %v165_v9 = vld [vmem:[#allocation5 + $0x1e8] sm:$0xff]  ;;  %v706_v13 = vpack.c.bf16 %v147_v5, %v146_v3  ;;  %v676_v14 = vpack.c.bf16 %v133_v7, %v132_v6  ;;  %v43_v17 = vld [vmem:[#allocation2 + $0x18] sm:$0xff] }
  0x39   :  { %699 = vmatpush3.bf16.msra.mxu1 %v698_v51  ;;  %669 = vmatprep.subr.bf16.mxu0 %v668_v52  ;;  %v116_v11 = vld [vmem:[#allocation5 + $0x60] sm:$0xff]  ;;  %v117_v12 = vld [vmem:[#allocation5 + $0x68] sm:$0xff]  ;;  %v708_v18 = vpack.c.bf16 %v165_v9, %v164_v8  ;;  %v134_v20 = vld [vmem:[#allocation5 + $0xf0] sm:$0xff] }
  0x3a   :  { %701 = vmatprep.subr.bf16.mxu1 %v700_v56  ;;  %v148_v15 = vld [vmem:[#allocation5 + $0x160] sm:$0xff]  ;;  %v41_v16 = vld [vmem:[#allocation2 + $0x8] sm:$0xff]  ;;  %v135_v21 = vld [vmem:[#allocation5 + $0xf8] sm:$0xff]  ;;  %377 = vmatprep.mubr.f32.mxu1 %v43_v17  ;;  %v678_v24 = vpack.c.bf16 %v117_v12, %v116_v11 }
  0x3b   :  { %v149_v19 = vld [vmem:[#allocation5 + $0x168] sm:$0xff]  ;;  %232 = vmatprep.mubr.f32.mxu0 %v41_v16  ;;  %v166_v22 = vld [vmem:[#allocation5 + $0x1f0] sm:$0xff]  ;;  %v167_v23 = vld [vmem:[#allocation5 + $0x1f8] sm:$0xff]  ;;  %v680_v26 = vpack.c.bf16 %v135_v21, %v134_v20 }
  0x3c   :  { %671 = vmatpush3.bf16.msra.mxu0 %v670_v62  ;;  %v710_v25 = vpack.c.bf16 %v149_v19, %v148_v15  ;;  %v118_v27 = vld [vmem:[#allocation5 + $0x70] sm:$0xff]  ;;  %v119_v28 = vld [vmem:[#allocation5 + $0x78] sm:$0xff]  ;;  %v712_v29 = vpack.c.bf16 %v167_v23, %v166_v22  ;;  %v40_v34 = vld [vmem:[#allocation2] sm:$0xff] }
  0x3d   :  { %703 = vmatpush3.bf16.msra.mxu1 %v702_v63  ;;  %673 = vmatprep.subr.bf16.mxu0 %v672_v0  ;;  %v150_v30 = vld [vmem:[#allocation5 + $0x170] sm:$0xff]  ;;  %v151_v31 = vld [vmem:[#allocation5 + $0x178] sm:$0xff]  ;;  %v682_v32 = vpack.c.bf16 %v119_v28, %v118_v27  ;;  %v45_v36 = vld [vmem:[#allocation2 + $0x28] sm:$0xff] }
  0x3e   :  { %705 = vmatprep.subr.bf16.mxu1 %v704_v4  ;;  %v714_v33 = vpack.c.bf16 %v151_v31, %v150_v30  ;;  %v42_v35 = vld [vmem:[#allocation2 + $0x10] sm:$0xff]  ;;  %v47_v37 = vld [vmem:[#allocation2 + $0x38] sm:$0xff]  ;;  %v44_v38 = vld [vmem:[#allocation2 + $0x20] sm:$0xff] }
  0x3f   :  { %v46_v39 = vld [vmem:[#allocation2 + $0x30] sm:$0xff]  ;;  %v49_v40 = vld [vmem:[#allocation2 + $0x48] sm:$0xff]  ;;  %v51_v41 = vld [vmem:[#allocation2 + $0x58] sm:$0xff] }
  0x40   :  { %675 = vmatpush3.bf16.msra.mxu0 %v674_v10  ;;  %v48_v42 = vld [vmem:[#allocation2 + $0x40] sm:$0xff]  ;;  %v50_v43 = vld [vmem:[#allocation2 + $0x50] sm:$0xff]  ;;  %v53_v44 = vld [vmem:[#allocation2 + $0x68] sm:$0xff] }
  0x41   :  { %707 = vmatpush3.bf16.msra.mxu1 %v706_v13  ;;  %677 = vmatprep.subr.bf16.mxu0 %v676_v14  ;;  %v55_v45 = vld [vmem:[#allocation2 + $0x78] sm:$0xff]  ;;  %v52_v46 = vld [vmem:[#allocation2 + $0x60] sm:$0xff]  ;;  %v54_v47 = vld [vmem:[#allocation2 + $0x70] sm:$0xff] }
  0x42   :  { %709 = vmatprep.subr.bf16.mxu1 %v708_v18  ;;  %v57_v48 = vld [vmem:[#allocation2 + $0x88] sm:$0xff]  ;;  %v59_v49 = vld [vmem:[#allocation2 + $0x98] sm:$0xff]  ;;  %v56_v50 = vld [vmem:[#allocation2 + $0x80] sm:$0xff] }
  0x43   :  { %v58_v51 = vld [vmem:[#allocation2 + $0x90] sm:$0xff]  ;;  %v61_v52 = vld [vmem:[#allocation2 + $0xa8] sm:$0xff]  ;;  %v63_v53 = vld [vmem:[#allocation2 + $0xb8] sm:$0xff] }
  0x44   :  { %679 = vmatpush3.bf16.msra.mxu0 %v678_v24  ;;  %v60_v54 = vld [vmem:[#allocation2 + $0xa0] sm:$0xff]  ;;  %v62_v55 = vld [vmem:[#allocation2 + $0xb0] sm:$0xff]  ;;  %v65_v56 = vld [vmem:[#allocation2 + $0xc8] sm:$0xff] }
  0x45   :  { %711 = vmatpush3.bf16.msra.mxu1 %v710_v25  ;;  %681 = vmatprep.subr.bf16.mxu0 %v680_v26  ;;  %v67_v57 = vld [vmem:[#allocation2 + $0xd8] sm:$0xff]  ;;  %v64_v58 = vld [vmem:[#allocation2 + $0xc0] sm:$0xff]  ;;  %v66_v59 = vld [vmem:[#allocation2 + $0xd0] sm:$0xff] }
  0x46   :  { %713 = vmatprep.subr.bf16.mxu1 %v712_v29  ;;  %v69_v60 = vld [vmem:[#allocation2 + $0xe8] sm:$0xff]  ;;  %v71_v61 = vld [vmem:[#allocation2 + $0xf8] sm:$0xff]  ;;  %v68_v62 = vld [vmem:[#allocation2 + $0xe0] sm:$0xff] }
  0x47   :  { %v70_v63 = vld [vmem:[#allocation2 + $0xf0] sm:$0xff]  ;;  %v73_v0 = vld [vmem:[#allocation2 + $0x108] sm:$0xff]  ;;  %v75_v1 = vld [vmem:[#allocation2 + $0x118] sm:$0xff] }
  0x48   :  { %683 = vmatpush3.bf16.msra.mxu0 %v682_v32  ;;  %v72_v2 = vld [vmem:[#allocation2 + $0x100] sm:$0xff]  ;;  %v74_v3 = vld [vmem:[#allocation2 + $0x110] sm:$0xff]  ;;  %v77_v4 = vld [vmem:[#allocation2 + $0x128] sm:$0xff] }
  0x49   :  { %715 = vmatpush3.bf16.msra.mxu1 %v714_v33  ;;  %v79_v5 = vld [vmem:[#allocation2 + $0x138] sm:$0xff]  ;;  %v76_v6 = vld [vmem:[#allocation2 + $0x120] sm:$0xff]  ;;  %v78_v7 = vld [vmem:[#allocation2 + $0x130] sm:$0xff] }
  0x4a   :  { %v81_v8 = vld [vmem:[#allocation2 + $0x148] sm:$0xff]  ;;  %v83_v9 = vld [vmem:[#allocation2 + $0x158] sm:$0xff]  ;;  %v80_v10 = vld [vmem:[#allocation2 + $0x140] sm:$0xff] }
  0x4b   :  { %233 = vmatmul.mubr.f32.vlgmr.msra.gmra.mrb[0].mxu0 %v40_v34  ;;  %v82_v11 = vld [vmem:[#allocation2 + $0x150] sm:$0xff]  ;;  %v85_v12 = vld [vmem:[#allocation2 + $0x168] sm:$0xff]  ;;  %v87_v13 = vld [vmem:[#allocation2 + $0x178] sm:$0xff] }
  0x4c   :  { %378 = vmatmul.mubr.f32.vlgmr.msra.gmra.mrb[0].mxu1 %v42_v35  ;;  %237 = vmatprep.mubr.f32.mxu0 %v45_v36  ;;  %v84_v14 = vld [vmem:[#allocation2 + $0x160] sm:$0xff]  ;;  %v86_v15 = vld [vmem:[#allocation2 + $0x170] sm:$0xff]  ;;  %v89_v16 = vld [vmem:[#allocation2 + $0x188] sm:$0xff] }
  0x4d   :  { %382 = vmatprep.mubr.f32.mxu1 %v47_v37  ;;  %v91_v17 = vld [vmem:[#allocation2 + $0x198] sm:$0xff]  ;;  %v88_v18 = vld [vmem:[#allocation2 + $0x180] sm:$0xff]  ;;  %v90_v19 = vld [vmem:[#allocation2 + $0x190] sm:$0xff] }
  0x4e   :  { %v93_v20 = vld [vmem:[#allocation2 + $0x1a8] sm:$0xff]  ;;  %v95_v21 = vld [vmem:[#allocation2 + $0x1b8] sm:$0xff]  ;;  %v92_v22 = vld [vmem:[#allocation2 + $0x1a0] sm:$0xff] }
  0x4f   :  { %238 = vmatmul.mubr.f32.gmra.mrb[2].mxu0 %v44_v38  ;;  %v94_v23 = vld [vmem:[#allocation2 + $0x1b0] sm:$0xff]  ;;  %v97_v24 = vld [vmem:[#allocation2 + $0x1c8] sm:$0xff]  ;;  %v99_v25 = vld [vmem:[#allocation2 + $0x1d8] sm:$0xff] }
  0x50   :  { %383 = vmatmul.mubr.f32.gmra.mrb[2].mxu1 %v46_v39  ;;  %242 = vmatprep.mubr.f32.mxu0 %v49_v40  ;;  %v96_v26 = vld [vmem:[#allocation2 + $0x1c0] sm:$0xff]  ;;  %v98_v27 = vld [vmem:[#allocation2 + $0x1d0] sm:$0xff]  ;;  %v101_v28 = vld [vmem:[#allocation2 + $0x1e8] sm:$0xff] }
  0x51   :  { %387 = vmatprep.mubr.f32.mxu1 %v51_v41  ;;  %v103_v29 = vld [vmem:[#allocation2 + $0x1f8] sm:$0xff]  ;;  %v100_v30 = vld [vmem:[#allocation2 + $0x1e0] sm:$0xff]  ;;  %v102_v31 = vld [vmem:[#allocation2 + $0x1f0] sm:$0xff] }
  0x53   :  { %243 = vmatmul.mubr.f32.gmra.mrb[4].mxu0 %v48_v42 }
  0x54   :  { %388 = vmatmul.mubr.f32.gmra.mrb[4].mxu1 %v50_v43  ;;  %247 = vmatprep.mubr.f32.mxu0 %v53_v44 }
  0x55   :  { %392 = vmatprep.mubr.f32.mxu1 %v55_v45 }
  0x57   :  { %248 = vmatmul.mubr.f32.gmra.mrb[6].mxu0 %v52_v46 }
  0x58   :  { %393 = vmatmul.mubr.f32.gmra.mrb[6].mxu1 %v54_v47  ;;  %252 = vmatprep.mubr.f32.mxu0 %v57_v48 }
  0x59   :  { %397 = vmatprep.mubr.f32.mxu1 %v59_v49 }
  0x5b   :  { %253 = vmatmul.mubr.f32.gmra.mrb[8].mxu0 %v56_v50 }
  0x5c   :  { %398 = vmatmul.mubr.f32.gmra.mrb[8].mxu1 %v58_v51  ;;  %257 = vmatprep.mubr.f32.mxu0 %v61_v52 }
  0x5d   :  { %402 = vmatprep.mubr.f32.mxu1 %v63_v53 }
  0x5f   :  { %258 = vmatmul.mubr.f32.gmra.mrb[10].mxu0 %v60_v54 }
  0x60   :  { %403 = vmatmul.mubr.f32.gmra.mrb[10].mxu1 %v62_v55  ;;  %262 = vmatprep.mubr.f32.mxu0 %v65_v56 }
  0x61   :  { %407 = vmatprep.mubr.f32.mxu1 %v67_v57 }
  0x63   :  { %263 = vmatmul.mubr.f32.gmra.mrb[12].mxu0 %v64_v58 }
  0x64   :  { %408 = vmatmul.mubr.f32.gmra.mrb[12].mxu1 %v66_v59  ;;  %267 = vmatprep.mubr.f32.mxu0 %v69_v60 }
  0x65   :  { %412 = vmatprep.mubr.f32.mxu1 %v71_v61 }
  0x67   :  { %268 = vmatmul.mubr.f32.gmra.mrb[14].mxu0 %v68_v62 }
  0x68   :  { %413 = vmatmul.mubr.f32.gmra.mrb[14].mxu1 %v70_v63  ;;  %272 = vmatprep.mubr.f32.mxu0 %v73_v0 }
  0x69   :  { %417 = vmatprep.mubr.f32.mxu1 %v75_v1 }
  0x6b   :  { %273 = vmatmul.mubr.f32.gmra.mrb[16].mxu0 %v72_v2 }
  0x6c   :  { %418 = vmatmul.mubr.f32.gmra.mrb[16].mxu1 %v74_v3  ;;  %277 = vmatprep.mubr.f32.mxu0 %v77_v4 }
  0x6d   :  { %422 = vmatprep.mubr.f32.mxu1 %v79_v5 }
  0x6f   :  { %278 = vmatmul.mubr.f32.gmra.mrb[18].mxu0 %v76_v6 }
  0x70   :  { %423 = vmatmul.mubr.f32.gmra.mrb[18].mxu1 %v78_v7  ;;  %282 = vmatprep.mubr.f32.mxu0 %v81_v8 }
  0x71   :  { %427 = vmatprep.mubr.f32.mxu1 %v83_v9 }
  0x73   :  { %283 = vmatmul.mubr.f32.gmra.mrb[20].mxu0 %v80_v10 }
  0x74   :  { %428 = vmatmul.mubr.f32.gmra.mrb[20].mxu1 %v82_v11  ;;  %287 = vmatprep.mubr.f32.mxu0 %v85_v12 }
  0x75   :  { %432 = vmatprep.mubr.f32.mxu1 %v87_v13 }
  0x77   :  { %288 = vmatmul.mubr.f32.gmra.mrb[22].mxu0 %v84_v14 }
  0x78   :  { %433 = vmatmul.mubr.f32.gmra.mrb[22].mxu1 %v86_v15  ;;  %292 = vmatprep.mubr.f32.mxu0 %v89_v16 }
  0x79   :  { %437 = vmatprep.mubr.f32.mxu1 %v91_v17 }
  0x7b   :  { %293 = vmatmul.mubr.f32.gmra.mrb[24].mxu0 %v88_v18 }
  0x7c   :  { %438 = vmatmul.mubr.f32.gmra.mrb[24].mxu1 %v90_v19  ;;  %297 = vmatprep.mubr.f32.mxu0 %v93_v20 }
  0x7d   :  { %442 = vmatprep.mubr.f32.mxu1 %v95_v21 }
  0x7f   :  { %298 = vmatmul.mubr.f32.gmra.mrb[26].mxu0 %v92_v22 }
  0x80   :  { %443 = vmatmul.mubr.f32.gmra.mrb[26].mxu1 %v94_v23  ;;  %302 = vmatprep.mubr.f32.mxu0 %v97_v24 }
  0x81   :  { %447 = vmatprep.mubr.f32.mxu1 %v99_v25 }
  0x83   :  { %303 = vmatmul.mubr.f32.gmra.mrb[28].mxu0 %v96_v26 }
  0x84   :  { %448 = vmatmul.mubr.f32.gmra.mrb[28].mxu1 %v98_v27  ;;  %307 = vmatprep.mubr.f32.mxu0 %v101_v28 }
  0x85   :  { %452 = vmatprep.mubr.f32.mxu1 %v103_v29 }
  0x87   :  { %308 = vmatmul.mubr.f32.gmra.mrb[30].mxu0 %v100_v30 }
  0x88   :  { %453 = vmatmul.mubr.f32.gmra.mrb[30].mxu1 %v102_v31 }
 0x11e   :  { %v524_v32 = vpop.f32.mrb[0].mxu0 }
 0x11f   :  { %v604_v33 = vpop.f32.mrb[0].mxu1  ;;  %v525_v34 = vpop.f32.mrb[1].mxu0 }
 0x120   :  { %v526_v35 = vadd.f32 %v525_v34, %v524_v32  ;;  %v605_v36 = vpop.f32.mrb[1].mxu1 }
 0x121   :  { %v606_v37 = vadd.f32 %v605_v36, %v604_v33 }
 0x122   :  { %v527_v38 = vpop.f32.mrb[2].mxu0 }
 0x123   :  { %v380_v39 = vadd.f32 %v606_v37, %v526_v35  ;;  %v607_v40 = vpop.f32.mrb[2].mxu1  ;;  %v528_v41 = vpop.f32.mrb[3].mxu0 }
 0x124   :  { %v529_v42 = vadd.f32 %v528_v41, %v527_v38  ;;  %v608_v43 = vpop.f32.mrb[3].mxu1 }
 0x125   :  { %458 = vst [vmem:[#allocation7] sm:$0xff] %v380_v39  ;;  %v609_v44 = vadd.f32 %v608_v43, %v607_v40 }
 0x126   :  { %v530_v45 = vpop.f32.mrb[4].mxu0 }
 0x127   :  { %v385_v46 = vadd.f32 %v609_v44, %v529_v42  ;;  %v610_v47 = vpop.f32.mrb[4].mxu1  ;;  %v531_v48 = vpop.f32.mrb[5].mxu0 }
 0x128   :  { %v532_v49 = vadd.f32 %v531_v48, %v530_v45  ;;  %v611_v50 = vpop.f32.mrb[5].mxu1 }
 0x129   :  { %459 = vst [vmem:[#allocation7 + $0x8] sm:$0xff] %v385_v46  ;;  %v612_v51 = vadd.f32 %v611_v50, %v610_v47 }
 0x12a   :  { %v533_v52 = vpop.f32.mrb[6].mxu0 }
 0x12b   :  { %v390_v53 = vadd.f32 %v612_v51, %v532_v49  ;;  %v613_v54 = vpop.f32.mrb[6].mxu1  ;;  %v534_v55 = vpop.f32.mrb[7].mxu0 }
 0x12c   :  { %v535_v56 = vadd.f32 %v534_v55, %v533_v52  ;;  %v614_v57 = vpop.f32.mrb[7].mxu1 }
 0x12d   :  { %460 = vst [vmem:[#allocation7 + $0x10] sm:$0xff] %v390_v53  ;;  %v615_v58 = vadd.f32 %v614_v57, %v613_v54 }
 0x12e   :  { %v536_v59 = vpop.f32.mrb[8].mxu0 }
 0x12f   :  { %v395_v60 = vadd.f32 %v615_v58, %v535_v56  ;;  %v616_v61 = vpop.f32.mrb[8].mxu1  ;;  %v537_v62 = vpop.f32.mrb[9].mxu0 }
 0x130   :  { %v538_v63 = vadd.f32 %v537_v62, %v536_v59  ;;  %v617_v0 = vpop.f32.mrb[9].mxu1 }
 0x131   :  { %461 = vst [vmem:[#allocation7 + $0x18] sm:$0xff] %v395_v60  ;;  %v618_v1 = vadd.f32 %v617_v0, %v616_v61 }
 0x132   :  { %v539_v2 = vpop.f32.mrb[10].mxu0 }
 0x133   :  { %v400_v3 = vadd.f32 %v618_v1, %v538_v63  ;;  %v619_v4 = vpop.f32.mrb[10].mxu1  ;;  %v540_v5 = vpop.f32.mrb[11].mxu0 }
 0x134   :  { %v541_v6 = vadd.f32 %v540_v5, %v539_v2  ;;  %v620_v7 = vpop.f32.mrb[11].mxu1 }
 0x135   :  { %462 = vst [vmem:[#allocation7 + $0x20] sm:$0xff] %v400_v3  ;;  %v621_v8 = vadd.f32 %v620_v7, %v619_v4 }
 0x136   :  { %v542_v9 = vpop.f32.mrb[12].mxu0 }
 0x137   :  { %v405_v10 = vadd.f32 %v621_v8, %v541_v6  ;;  %v622_v11 = vpop.f32.mrb[12].mxu1  ;;  %v543_v12 = vpop.f32.mrb[13].mxu0 }
 0x138   :  { %v544_v13 = vadd.f32 %v543_v12, %v542_v9  ;;  %v623_v14 = vpop.f32.mrb[13].mxu1 }
 0x139   :  { %463 = vst [vmem:[#allocation7 + $0x28] sm:$0xff] %v405_v10  ;;  %v624_v15 = vadd.f32 %v623_v14, %v622_v11 }
 0x13a   :  { %v545_v16 = vpop.f32.mrb[14].mxu0 }
 0x13b   :  { %v410_v17 = vadd.f32 %v624_v15, %v544_v13  ;;  %v625_v18 = vpop.f32.mrb[14].mxu1  ;;  %v546_v19 = vpop.f32.mrb[15].mxu0 }
 0x13c   :  { %v547_v20 = vadd.f32 %v546_v19, %v545_v16  ;;  %v626_v21 = vpop.f32.mrb[15].mxu1 }
 0x13d   :  { %464 = vst [vmem:[#allocation7 + $0x30] sm:$0xff] %v410_v17  ;;  %v627_v22 = vadd.f32 %v626_v21, %v625_v18 }
 0x13e   :  { %v548_v23 = vpop.f32.mrb[16].mxu0 }
 0x13f   :  { %v415_v24 = vadd.f32 %v627_v22, %v547_v20  ;;  %v628_v25 = vpop.f32.mrb[16].mxu1  ;;  %v549_v26 = vpop.f32.mrb[17].mxu0 }
 0x140   :  { %v550_v27 = vadd.f32 %v549_v26, %v548_v23  ;;  %v629_v28 = vpop.f32.mrb[17].mxu1 }
 0x141   :  { %465 = vst [vmem:[#allocation7 + $0x38] sm:$0xff] %v415_v24  ;;  %v630_v29 = vadd.f32 %v629_v28, %v628_v25 }
 0x142   :  { %v551_v30 = vpop.f32.mrb[18].mxu0 }
 0x143   :  { %v420_v31 = vadd.f32 %v630_v29, %v550_v27  ;;  %v631_v32 = vpop.f32.mrb[18].mxu1  ;;  %v552_v33 = vpop.f32.mrb[19].mxu0 }
 0x144   :  { %v553_v34 = vadd.f32 %v552_v33, %v551_v30  ;;  %v632_v35 = vpop.f32.mrb[19].mxu1 }
 0x145   :  { %466 = vst [vmem:[#allocation7 + $0x40] sm:$0xff] %v420_v31  ;;  %v633_v36 = vadd.f32 %v632_v35, %v631_v32 }
 0x146   :  { %v554_v37 = vpop.f32.mrb[20].mxu0 }
 0x147   :  { %v425_v38 = vadd.f32 %v633_v36, %v553_v34  ;;  %v634_v39 = vpop.f32.mrb[20].mxu1  ;;  %v555_v40 = vpop.f32.mrb[21].mxu0 }
 0x148   :  { %v556_v41 = vadd.f32 %v555_v40, %v554_v37  ;;  %v635_v42 = vpop.f32.mrb[21].mxu1 }
 0x149   :  { %467 = vst [vmem:[#allocation7 + $0x48] sm:$0xff] %v425_v38  ;;  %v636_v43 = vadd.f32 %v635_v42, %v634_v39 }
 0x14a   :  { %v557_v44 = vpop.f32.mrb[22].mxu0 }
 0x14b   :  { %v430_v45 = vadd.f32 %v636_v43, %v556_v41  ;;  %v637_v46 = vpop.f32.mrb[22].mxu1  ;;  %v558_v47 = vpop.f32.mrb[23].mxu0 }
 0x14c   :  { %v559_v48 = vadd.f32 %v558_v47, %v557_v44  ;;  %v638_v49 = vpop.f32.mrb[23].mxu1 }
 0x14d   :  { %468 = vst [vmem:[#allocation7 + $0x50] sm:$0xff] %v430_v45  ;;  %v639_v50 = vadd.f32 %v638_v49, %v637_v46 }
 0x14e   :  { %v560_v51 = vpop.f32.mrb[24].mxu0 }
 0x14f   :  { %v435_v52 = vadd.f32 %v639_v50, %v559_v48  ;;  %v640_v53 = vpop.f32.mrb[24].mxu1  ;;  %v561_v54 = vpop.f32.mrb[25].mxu0 }
 0x150   :  { %v562_v55 = vadd.f32 %v561_v54, %v560_v51  ;;  %v641_v56 = vpop.f32.mrb[25].mxu1 }
 0x151   :  { %469 = vst [vmem:[#allocation7 + $0x58] sm:$0xff] %v435_v52  ;;  %v642_v57 = vadd.f32 %v641_v56, %v640_v53 }
 0x152   :  { %v563_v58 = vpop.f32.mrb[26].mxu0 }
 0x153   :  { %v440_v59 = vadd.f32 %v642_v57, %v562_v55  ;;  %v643_v60 = vpop.f32.mrb[26].mxu1  ;;  %v564_v61 = vpop.f32.mrb[27].mxu0 }
 0x154   :  { %v565_v62 = vadd.f32 %v564_v61, %v563_v58  ;;  %v644_v63 = vpop.f32.mrb[27].mxu1 }
 0x155   :  { %470 = vst [vmem:[#allocation7 + $0x60] sm:$0xff] %v440_v59  ;;  %v645_v0 = vadd.f32 %v644_v63, %v643_v60 }
 0x156   :  { %v566_v1 = vpop.f32.mrb[28].mxu0 }
 0x157   :  { %v445_v2 = vadd.f32 %v645_v0, %v565_v62  ;;  %v646_v3 = vpop.f32.mrb[28].mxu1  ;;  %v567_v4 = vpop.f32.mrb[29].mxu0 }
 0x158   :  { %v568_v5 = vadd.f32 %v567_v4, %v566_v1  ;;  %v647_v6 = vpop.f32.mrb[29].mxu1 }
 0x159   :  { %471 = vst [vmem:[#allocation7 + $0x68] sm:$0xff] %v445_v2  ;;  %v648_v7 = vadd.f32 %v647_v6, %v646_v3 }
 0x15a   :  { %v569_v8 = vpop.f32.mrb[30].mxu0 }
 0x15b   :  { %v450_v9 = vadd.f32 %v648_v7, %v568_v5  ;;  %v649_v10 = vpop.f32.mrb[30].mxu1  ;;  %v570_v11 = vpop.f32.mrb[31].mxu0 }
 0x15c   :  { %v571_v12 = vadd.f32 %v570_v11, %v569_v8  ;;  %v650_v13 = vpop.f32.mrb[31].mxu1 }
 0x15d   :  { %472 = vst [vmem:[#allocation7 + $0x70] sm:$0xff] %v450_v9  ;;  %v651_v14 = vadd.f32 %v650_v13, %v649_v10 }
 0x15f   :  { %v455_v15 = vadd.f32 %v651_v14, %v571_v12 }
 0x161   :  { %473 = vst [vmem:[#allocation7 + $0x78] sm:$0xff] %v455_v15 }
 0x162   :  { %778 = shalt.err (!%p775_p6)
}
 0x163   :  { %s779_s12 = scalar_lea.hbm %s861_s2, 2048 }
 0x164   :  { %p780_p7 = scmp.ne.s32.totalorder %s861_s2, %s779_s12  ;;  %p783_p8 = scmp.lt.u32.totalorder %s779_s12, %s861_s2 }
 0x166   :  { %p785_p9 = pnand %p783_p8, %p780_p7 }
 0x168   :  { %788 = shalt.err (!%p785_p9)
}
 0x169   :  { %485 = dma.vmem_to_hbm [thread:$0]  %s480_s8, 2048, %s861_s2, [#allocation4], %s799_s0, %s799_s0, %s800_s5  }
 0x16a   :  { %793 = dma.done.wait [#allocation4], 2048  }
 0x16b   :  { %794 = vsyncadd [#allocation4], 4294965248 }
 0x16c   :  { %489 = vsyncpa [#allocation3], 1 }
 0x16d   :  { %490 = vsyncpa [#allocation6], 1 }
 0x16e   :  { %491 = vsyncpa [#allocation4], 1 }

</bundles_post_ra>
